<compile_context>
chip_gen: v6e
topology: v6e:2x2x1
jax: 0.10.0
libtpu: 0.0.40
codegen_flags: <defaults>
</compile_context>

<pallas_src>
import functools

import jax
import jax.numpy as jnp
from jax import lax
from jax.experimental import pallas as pl
from jax.experimental.pallas import tpu as pltpu

# Synthetic config (cfg.MODEL.NUMBER_CARS, cfg.CAR_CLS.CLS_SPECIFIC_ROT)
NUMBER_CARS = 8
CLS_SPECIFIC_ROT = True      # rot_pred output dim = 4 * NUMBER_CARS

_LANE = 128


def _round_up(v, m):
    return (v + m - 1) // m * m


def _head_kernel(x_ref, w_ref, b_ref, out_ref, *, n_cls, n_rot):
    """One fused matmul + masked softmax, one lane-dense output slab.

    Fused-output column layout (padded to out_ref.shape[1] lanes):
        [0, C)        cls_score
        [C, C+R)      rot_pred
        [C+R, 2C+R)   cls_score duplicate  -> replaced by softmax(cls_score)
        [2C+R, P)     zero padding
    """
    x = x_ref[...]                                             # (TN, D)
    s = jnp.dot(x, w_ref[...],
                preferred_element_type=jnp.float32) + b_ref[...]   # (TN, P) f32

    col = lax.broadcasted_iota(jnp.int32, s.shape, 1)
    sm_lo = n_cls + n_rot
    sm_hi = 2 * n_cls + n_rot
    sm_zone = (col >= sm_lo) & (col < sm_hi)                   # duplicate block

    # Numerically stable masked softmax over the duplicate cls_score block,
    # done with full-lane-width VPU ops (no lane-sparse slices).
    s_masked = jnp.where(sm_zone, s, -jnp.inf)
    m = jnp.max(s_masked, axis=1, keepdims=True)
    e = jnp.exp(s_masked - m)                                  # 0 outside zone
    denom = jnp.sum(e, axis=1, keepdims=True)
    r = pl.reciprocal(denom, approx=True)                      # EUP slot (free)
    r = r * (2.0 - denom * r)                                  # Newton -> f32 accuracy
    cls = e * r

    keep = col < sm_lo                                         # cls_score | rot columns
    out_ref[...] = jnp.where(sm_zone, cls, jnp.where(keep, s, 0.0))


def fast_rcnn_outputs_car_cls_rot_forward(x, wc, bc, wr, br, *,
                                          compute_dtype=jnp.float32,
                                          tile_n=256):
    """x: (N, D) or (N, D, 1, 1).  wc: (D, C), bc: (1, C), wr: (D, R), br: (1, R).

    Returns (cls_score (N, C), cls (N, C), rot_pred (N, R)), all float32.
    """
    if x.ndim == 4:
        x = x.squeeze(3).squeeze(2)                            # matches torch squeeze(3).squeeze(2)
    n, d = x.shape
    c = wc.shape[1]
    r = wr.shape[1]

    p_out = _round_up(2 * c + r, _LANE)                        # lane-dense fused width

    # Fused, lane-padded weight / bias with layout [Wc | Wr | Wc | 0].
    w_fused = jnp.zeros((d, p_out), jnp.float32)
    w_fused = w_fused.at[:, :c].set(wc)
    w_fused = w_fused.at[:, c:c + r].set(wr)
    w_fused = w_fused.at[:, c + r:2 * c + r].set(wc)
    b_fused = jnp.zeros((1, p_out), jnp.float32)
    b_fused = b_fused.at[:, :c].set(bc)
    b_fused = b_fused.at[:, c:c + r].set(br)
    b_fused = b_fused.at[:, c + r:2 * c + r].set(bc)

    # Row tiling: pad N to a tile multiple so the grid can pipeline x tiles
    # and (on v7x) shard row tiles across both TensorCores.
    tn = min(tile_n, _round_up(n, 8))
    n_pad = _round_up(n, tn)
    x_p = x if n_pad == n else jnp.pad(x, ((0, n_pad - n), (0, 0)))

    x_p = x_p.astype(compute_dtype)          # bf16 here halves HBM traffic on v5e/v6e/v7x
    w_in = w_fused.astype(compute_dtype)     # bias stays f32 (added to f32 accumulator)

    slab = pl.pallas_call(
        functools.partial(_head_kernel, n_cls=c, n_rot=r),
        out_shape=jax.ShapeDtypeStruct((n_pad, p_out), jnp.float32),
        grid=(n_pad // tn,),
        in_specs=[
            pl.BlockSpec((tn, d), lambda i: (i, 0)),            # x tiles, pipelined
            pl.BlockSpec((d, p_out), lambda i: (0, 0)),         # weights VMEM-resident
            pl.BlockSpec((1, p_out), lambda i: (0, 0)),         # bias VMEM-resident
        ],
        out_specs=pl.BlockSpec((tn, p_out), lambda i: (i, 0)),  # one lane-dense slab
        compiler_params=pltpu.CompilerParams(
            dimension_semantics=("parallel",)),                 # v7x: both TCs
    )(x_p, w_in, b_fused)

    # Free wrapper-side slicing back to logical outputs.
    cls_score = slab[:n, :c]
    rot_pred = slab[:n, c:c + r]
    cls = slab[:n, c + r:2 * c + r]
    return cls_score, cls, rot_pred


def init_params(key, dim_in):
    """Deterministic init mirroring the module's _init_weights."""
    k1, k2 = jax.random.split(key)
    rot_out = 4 * NUMBER_CARS if CLS_SPECIFIC_ROT else 4
    # Stored as (in, out) = transpose of PyTorch nn.Linear weight.
    wc = 0.01 * jax.random.normal(k1, (dim_in, NUMBER_CARS), dtype=jnp.float32)
    bc = jnp.zeros((1, NUMBER_CARS), dtype=jnp.float32)
    wr = 0.001 * jax.random.normal(k2, (dim_in, rot_out), dtype=jnp.float32)
    br = jnp.zeros((1, rot_out), dtype=jnp.float32)
    return wc, bc, wr, br


if __name__ == "__main__":
    key = jax.random.PRNGKey(0)
    kx, kp = jax.random.split(key)

    batch, dim_in = 8, 32
    # 4-D input (N, dim_in, 1, 1), as produced by the upstream ROI head.
    x = jax.random.normal(kx, (batch, dim_in, 1, 1), dtype=jnp.float32)
    wc, bc, wr, br = init_params(kp, dim_in)

    cls_score, cls, rot_pred = fast_rcnn_outputs_car_cls_rot_forward(x, wc, bc, wr, br)
    jax.block_until_ready((cls_score, cls, rot_pred))

    # Sanity: reference in plain JAX.
    x2 = x.squeeze(3).squeeze(2)
    ref_cls_score = x2 @ wc + bc
    ref_cls = jax.nn.softmax(ref_cls_score, axis=1)
    ref_rot = x2 @ wr + br
    assert cls_score.shape == (batch, NUMBER_CARS)
    assert cls.shape == (batch, NUMBER_CARS)
    assert rot_pred.shape == (batch, 4 * NUMBER_CARS)
    assert jnp.allclose(cls_score, ref_cls_score, atol=1e-5)
    assert jnp.allclose(cls, ref_cls, atol=1e-5)
    assert jnp.allclose(rot_pred, ref_rot, atol=1e-5)
    assert jnp.allclose(jnp.sum(cls, axis=1), 1.0, atol=1e-5)

    print("KERNEL_OK")
</pallas_src>

<mosaic_0001>
module attributes {stable_mosaic.version = 11 : i64} {
  func.func @_head_kernel(%arg0: i32, %arg1: memref<8x32xf32, #tpu.memory_space<vmem>>, %arg2: memref<32x128xf32, #tpu.memory_space<vmem>>, %arg3: memref<1x128xf32, #tpu.memory_space<vmem>>, %arg4: memref<8x128xf32, #tpu.memory_space<vmem>>) attributes {dimension_semantics = [#tpu.dimension_semantics<parallel>], iteration_bounds = array<i64: 1>, scalar_prefetch = 0 : i64, scratch_operands = 0 : i64, tpu.core_type = #tpu.core_type<tc>, window_params = [{transform_indices = @transform_0, window_bounds = array<i64: 8, 32>}, {pipeline_mode = #tpu.pipeline_mode<synchronous>, transform_indices = @transform_1, window_bounds = array<i64: 32, 128>}, {pipeline_mode = #tpu.pipeline_mode<synchronous>, transform_indices = @transform_2, window_bounds = array<i64: 1, 128>}, {transform_indices = @transform_3, window_bounds = array<i64: 8, 128>}]} {
    %c0 = arith.constant 0 : index
    %c0_0 = arith.constant 0 : index
    %0 = vector.load %arg1[%c0, %c0_0] : memref<8x32xf32, #tpu.memory_space<vmem>>, vector<8x32xf32>
    %c0_1 = arith.constant 0 : index
    %c0_2 = arith.constant 0 : index
    %1 = vector.load %arg2[%c0_1, %c0_2] : memref<32x128xf32, #tpu.memory_space<vmem>>, vector<32x128xf32>
    %cst = arith.constant dense<0.000000e+00> : vector<8x128xf32>
    %2 = tpu.matmul %0, %1, %cst {dimension_numbers = #tpu.dot_dimension_numbers<[1], [0], [0], [1], [0, 0, 1, 1], [], []>} : vector<8x32xf32>, vector<32x128xf32>, vector<8x128xf32> -> vector<8x128xf32>
    %c0_3 = arith.constant 0 : index
    %c0_4 = arith.constant 0 : index
    %3 = vector.load %arg3[%c0_3, %c0_4] : memref<1x128xf32, #tpu.memory_space<vmem>>, vector<1x128xf32>
    %4 = vector.broadcast %3 : vector<1x128xf32> to vector<8x128xf32>
    %5 = arith.addf %2, %4 : vector<8x128xf32>
    %6 = tpu.iota {dimensions = array<i32: 1>} : vector<8x128xi32>
    %c40_i32 = arith.constant 40 : i32
    %7 = vector.broadcast %c40_i32 : i32 to vector<8x128xi32>
    %8 = arith.cmpi sge, %6, %7 : vector<8x128xi32>
    %c48_i32 = arith.constant 48 : i32
    %9 = vector.broadcast %c48_i32 : i32 to vector<8x128xi32>
    %10 = arith.cmpi slt, %6, %9 : vector<8x128xi32>
    %11 = arith.andi %8, %10 : vector<8x128xi1>
    %cst_5 = arith.constant 0xFF800000 : f32
    %12 = vector.broadcast %cst_5 : f32 to vector<8x128xf32>
    %13 = arith.select %11, %5, %12 : vector<8x128xi1>, vector<8x128xf32>
    %cst_6 = arith.constant dense<0xFF800000> : vector<8xf32>
    %14 = vector.multi_reduction <maximumf>, %13, %cst_6 [1] : vector<8x128xf32> to vector<8xf32>
    %15 = vector.shape_cast %14 : vector<8xf32> to vector<8x1xf32>
    %16 = vector.broadcast %15 : vector<8x1xf32> to vector<8x128xf32>
    %17 = arith.subf %13, %16 : vector<8x128xf32>
    %18 = math.exp %17 : vector<8x128xf32>
    %cst_7 = arith.constant dense<0.000000e+00> : vector<8xf32>
    %19 = vector.multi_reduction <add>, %18, %cst_7 [1] : vector<8x128xf32> to vector<8xf32>
    %20 = vector.shape_cast %19 : vector<8xf32> to vector<8x1xf32>
    %21 = tpu.reciprocal %20 {approx = true} : vector<8x1xf32> -> vector<8x1xf32>
    %22 = arith.mulf %20, %21 : vector<8x1xf32>
    %cst_8 = arith.constant 2.000000e+00 : f32
    %23 = vector.broadcast %cst_8 : f32 to vector<8x1xf32>
    %24 = arith.subf %23, %22 : vector<8x1xf32>
    %25 = arith.mulf %21, %24 : vector<8x1xf32>
    %26 = vector.broadcast %25 : vector<8x1xf32> to vector<8x128xf32>
    %27 = arith.mulf %18, %26 : vector<8x128xf32>
    %c40_i32_9 = arith.constant 40 : i32
    %28 = vector.broadcast %c40_i32_9 : i32 to vector<8x128xi32>
    %29 = arith.cmpi slt, %6, %28 : vector<8x128xi32>
    %cst_10 = arith.constant 0.000000e+00 : f32
    %30 = vector.broadcast %cst_10 : f32 to vector<8x128xf32>
    %31 = arith.select %29, %5, %30 : vector<8x128xi1>, vector<8x128xf32>
    %32 = arith.select %11, %27, %31 : vector<8x128xi1>, vector<8x128xf32>
    %c0_11 = arith.constant 0 : index
    %c0_12 = arith.constant 0 : index
    %33 = vector.load %arg4[%c0_11, %c0_12] : memref<8x128xf32, #tpu.memory_space<vmem>>, vector<8x128xf32>
    tpu.vector_store %arg4[%c0_11, %c0_12], %32 {strides = array<i32>} : memref<8x128xf32, #tpu.memory_space<vmem>>, vector<8x128xf32>,
    return
  }
  func.func @transform_0(%arg0: i32) -> (i32, i32) {
    %c0_i32 = arith.constant 0 : i32
    %c0_i32_0 = arith.constant 0 : i32
    return %arg0, %c0_i32 : i32, i32
  }
  func.func @transform_1(%arg0: i32) -> (i32, i32) {
    %c0_i32 = arith.constant 0 : i32
    %c0_i32_0 = arith.constant 0 : i32
    %c0_i32_1 = arith.constant 0 : i32
    return %c0_i32, %c0_i32_0 : i32, i32
  }
  func.func @transform_2(%arg0: i32) -> (i32, i32) {
    %c0_i32 = arith.constant 0 : i32
    %c0_i32_0 = arith.constant 0 : i32
    %c0_i32_1 = arith.constant 0 : i32
    return %c0_i32, %c0_i32_0 : i32, i32
  }
  func.func @transform_3(%arg0: i32) -> (i32, i32) {
    %c0_i32 = arith.constant 0 : i32
    %c0_i32_0 = arith.constant 0 : i32
    return %arg0, %c0_i32 : i32, i32
  }
}

</mosaic_0001>

<bundles_post_ra>
// kernel: tpu_custom_call.1
= control target key start
LH: loop header
LB: loop body
LE: loop exit
PB: predicated region body
PF: predicated region fallthrough
CT: control target
= control target key end

     0   :  { %8 = vsyncpa [#allocation3], 0  ;;  %s307_s0 = inlined_call_operand.hbm [shape: f32[8,32], index: 0, kind: input, shape index: {}]   ;;  %s308_s1 = inlined_call_operand.hbm [shape: f32[32,128], index: 1, kind: input, shape index: {}]   ;;  %s309_s2 = inlined_call_operand.vmem [shape: f32[1,128], index: 2, kind: input, shape index: {}]   ;;  %s310_s3 = inlined_call_operand.hbm [shape: f32[8,128], index: 3, kind: output, shape index: {}]  }
   0x1   :  { %9 = vsyncpa [#allocation6], 0 }
   0x2   :  { %10 = vsyncpa [#allocation4], 0  ;;  %s260_s12 = smov [#allocation2]   ;;  %s261_s14 = smov [#allocation5]  }
   0x3   :  { %s17_s13 = sshll.u32 %s260_s12, 4  ;;  %s26_s15 = sshll.u32 %s261_s14, 4  ;;  %s18_s13 = int_to_ptr.vmem [resolvable:$true] %s17_s13  ;;  %s27_s15 = int_to_ptr.vmem [resolvable:$true] %s26_s15 }
   0x4   :  { %s202_s16 = scalar_lea.vmem %s18_s13, 128  ;;  %p207_p1 = scmp.lt.s32.totalorder %s18_s13, %s18_s13 }
   0x5   :  { %p203_p0 = scmp.ne.s32.totalorder %s18_s13, %s202_s16  ;;  %p208_p2 = scmp.lt.s32.totalorder %s202_s16, %s202_s16 }
   0x7   :  { %p209_p3 = por %p208_p2, %p207_p1 }
   0x9   :  { %p210_p4 = pnand %p209_p3, %p203_p0 }
   0xb   :  { %213 = shalt.err (!%p210_p4)
}
   0xc   :  { %20 = dma.hbm_to_vmem [thread:$0]  %s307_s0, 128, %s18_s13, [#allocation3]  }
   0xd   :  { %s222_s19 = scalar_lea.vmem %s27_s15, 512  ;;  %p227_p6 = scmp.lt.s32.totalorder %s27_s15, %s27_s15 }
   0xe   :  { %p223_p5 = scmp.ne.s32.totalorder %s27_s15, %s222_s19  ;;  %p228_p7 = scmp.lt.s32.totalorder %s222_s19, %s222_s19 }
  0x10   :  { %p229_p8 = por %p228_p7, %p227_p6 }
  0x12   :  { %p230_p9 = pnand %p229_p8, %p223_p5 }
  0x14   :  { %233 = shalt.err (!%p230_p9)
}
  0x15   :  { %s262_s20 = smov 128   ;;  %s263_s21 = smov 8  }
  0x16   :  { %32 = dma.hbm_to_vmem [thread:$0]  %s308_s1, 512, %s27_s15, [#allocation6], %s262_s20, %s262_s20, %s263_s21  }
  0x17   :  { %254 = dma.done.wait [#allocation3], 128  }
  0x18   :  { %255 = vsyncadd [#allocation3], 4294967168 }
  0x19   :  { %256 = dma.done.wait [#allocation6], 512  }
  0x1a   :  { %257 = vsyncadd [#allocation6], 4294966784  ;;  %v264_v0 = vmov 0.0   ;;  %vm265_vm0 = vmmov 0   ;;  %v45_v1 = vld [vmem:[#allocation5 + $0x18] sm:$0xff]  ;;  %v44_v2 = vld [vmem:[#allocation5 + $0x10] sm:$0xff]  ;;  %v127_v6 = vlaneseq }
  0x1b   :  { %172 = vmatprep.subr.mxu0 %v264_v0  ;;  %180 = vmatprep.mubr.msk.f32.mxu0 %vm265_vm0, %v264_v0  ;;  %v43_v3 = vld [vmem:[#allocation5 + $0x8] sm:$0xff]  ;;  %v42_v4 = vld [vmem:[#allocation5] sm:$0xff]  ;;  %v41_v5 = vld [vmem:[#allocation2] sm:$0xff]  ;;  %vm53_vm1 = vcmask 261120  }
  0x1c   :  { %173 = vmatpush3.msra.mxu0 %v45_v1  ;;  %v128_v7 = vand.u32 127, %v127_v6  ;;  %v165_v8 = vld [vmem:[%s309_s2] ss:$0 sm:$0xff]  ;;  %s266_s2 = smov [#allocation7]  }
  0x1d   :  { %174 = vmatprep.subr.mxu0 %v264_v0  ;;  %s155_s24 = sshll.u32 %s266_s2, 4  ;;  %s156_s24 = int_to_ptr.vmem [resolvable:$true] %s155_s24 }
  0x1e   :  { %175 = vmatpush3.msra.mxu0 %v44_v2  ;;  %vm129_vm2 = vcmp.ge.s32.totalorder %v128_v7, 40  ;;  %vm130_vm3 = vcmp.lt.s32.totalorder %v128_v7, 48  ;;  %vm145_vm4 = vcmp.lt.s32.totalorder %v128_v7, 40  ;;  %s234_s25 = scalar_lea.vmem %s156_s24, 128  ;;  %p239_p11 = scmp.lt.s32.totalorder %s156_s24, %s156_s24 }
  0x1f   :  { %176 = vmatprep.subr.mxu0 %v264_v0  ;;  %vm296_vm5 = vmand %vm129_vm2, %vm130_vm3  ;;  %p235_p10 = scmp.ne.s32.totalorder %s156_s24, %s234_s25  ;;  %p240_p12 = scmp.lt.s32.totalorder %s234_s25, %s234_s25 }
  0x20   :  { %177 = vmatpush3.msra.mxu0 %v43_v3 }
  0x21   :  { %178 = vmatprep.subr.mxu0 %v264_v0  ;;  %p241_p13 = por %p240_p12, %p239_p11 }
  0x22   :  { %179 = vmatpush3.msra.mxu0 %v42_v4 }
  0x23   :  { %181 = vmatmul.mubr.msk.f32.vlgmr.msra.gmra.mxu0 %vm53_vm1, %v41_v5  ;;  %p242_p0 = pnand %p241_p13, %p235_p10 }
  0xe3   :  { %v123_v9 = vpop.f32.mrf.mxu0 }
  0xe4   :  { %v124_v11 = vadd.f32 %v165_v8, %v123_v9 }
  0xe5   :  { %v182_v12 = vpop.f32.mrf.mxu0 }
  0xe6   :  { %v146_v13 = vsel %vm145_vm4, %v124_v11, 0.0  ;;  %v132_v14 = vsel %vm296_vm5, %v124_v11, -inf }
  0xe7   :  { %133 = vmax.xlane.f32.xlu0 %v132_v14 }
 0x170   :  { %v134_v15 = vpop.xlane.xlu0 %133 }
 0x171   :  { %v135_v16 = vsub.f32 %v132_v14, %v134_v15 }
 0x173   :  { %v136_v17 = vmul.f32 1.442695, %v135_v16 }
 0x175   :  { %190 = vpow2.f32 %v136_v17 }
 0x182   :  { %v191_v18 = vpop.eup %190 }
 0x183   :  { %138 = vadd.xlane.f32.xlu0 %v191_v18 }
 0x20c   :  { %v139_v19 = vpop.xlane.xlu0 %138 }
 0x20d   :  { %192 = vrcp.f32 %v139_v19 }
 0x21a   :  { %v193_v20 = vpop.eup %192 }
 0x21b   :  { %v141_v21 = vmul.f32 %v193_v20, %v139_v19 }
 0x21d   :  { %v142_v22 = vsub.f32 2.0, %v141_v21 }
 0x21f   :  { %v143_v23 = vmul.f32 %v193_v20, %v142_v22 }
 0x221   :  { %v144_v24 = vmul.f32 %v191_v18, %v143_v23 }
 0x223   :  { %v147_v25 = vsel %vm296_vm5, %v144_v24, %v146_v13 }
 0x224   :  { %148 = vst [vmem:[#allocation7] sm:$0xff] %v147_v25 }
 0x225   :  { %245 = shalt.err (!%p242_p0)
}
 0x226   :  { %158 = dma.vmem_to_hbm [thread:$0]  %s156_s24, 128, %s310_s3, [#allocation4]  }
 0x227   :  { %258 = dma.done.wait [#allocation4], 128  }
 0x228   :  { %259 = vsyncadd [#allocation4], 4294967168 }
 0x229   :  { %162 = vsyncpa [#allocation3], 1 }
 0x22a   :  { %163 = vsyncpa [#allocation6], 1 }
 0x22b   :  { %164 = vsyncpa [#allocation4], 1 }

</bundles_post_ra>
